<compile_context>
chip_gen: v7x
topology: tpu7x:2x2x1
jax: 0.10.0
libtpu: 0.0.40
codegen_flags: <defaults>
</compile_context>

<pallas_src>
import jax
import jax.numpy as jnp
from jax.experimental import pallas as pl
from jax.experimental.pallas import tpu as pltpu

N_STATES = 4
N_ACTIONS = 20
H1 = 50
H2 = 100

LANES = 128          # lane width; hidden dims padded to this
# Parameter-slab row layout (all offsets are multiples of 8 -> tile aligned).
SLAB_W1 = 0          # rows [0, 8)    : w1 padded (4 real rows, 50 real cols)
SLAB_W2 = 8          # rows [8, 136)  : w2 padded (50 real rows, 100 real cols)
SLAB_W3 = 136        # rows [136, 264): w3 padded (100 real rows, 20 real cols)
SLAB_B = 264         # rows [264, 272): row 0 = b1, row 1 = b2, row 2 = b3
SLAB_ROWS = 272


def _round_up(x, m):
    return ((x + m - 1) // m) * m


def _cdiv(a, b):
    return -(-a // b)


def _num_tensorcores():
    """TensorCores per chip visible to one pallas_call (megacore sharding)."""
    try:
        kind = jax.devices()[0].device_kind.lower()
    except Exception:
        return 1
    # v7x (2 TCs/chip) and megacore parts (v4/v5p) benefit from >=2 grid steps.
    return 2 if any(t in kind for t in ("v7", "tpu7", "v4", "v5p")) else 1


def _mlp_kernel(x_ref, p_ref, o_ref):
    hp = jax.lax.Precision.HIGHEST
    x = x_ref[...]                                   # (TB, 4) f32

    b = p_ref[SLAB_B:SLAB_B + 8, :]                  # (8, 128); rows 0..2 = biases
    b1 = b[0:1, :]
    b2 = b[1:2, :]
    b3 = b[2:3, :]

    # ---- fc1 + ReLU on the MXU (K=4 contraction; Mosaic pads operands) -----
    w1 = p_ref[SLAB_W1:SLAB_W1 + N_STATES, :]        # (4, 128); 50 real cols
    h1 = jnp.dot(x, w1, preferred_element_type=jnp.float32, precision=hp) + b1
    h1 = jnp.maximum(h1, 0.0)                        # lanes >= 50 are exactly 0

    # ---- fc2 + ReLU on the MXU (lane-dense 128x128 operands) ---------------
    w2 = p_ref[SLAB_W2:SLAB_W2 + LANES, :]           # (128, 128)
    h2 = jnp.dot(h1, w2, preferred_element_type=jnp.float32, precision=hp) + b2
    h2 = jnp.maximum(h2, 0.0)                        # lanes >= 100 are exactly 0

    # ---- out (no activation) ------------------------------------------------
    w3 = p_ref[SLAB_W3:SLAB_W3 + LANES, :]           # (128, 128)
    y = jnp.dot(h2, w3, preferred_element_type=jnp.float32, precision=hp) + b3

    # Write only the 20 real action lanes (narrow output -> 6.4x less writeback).
    o_ref[...] = y[:, :N_ACTIONS].astype(o_ref.dtype)


def pack_params(w1, b1, w2, b2, w3, b3):
    """Pack the six parameter arrays into one lane-padded (272, 128) f32 slab.

    Weights use the (in_features, out_features) layout (transpose of PyTorch).
    Padded rows/columns are zero, so padded lanes stay exactly zero end-to-end.
    """
    slab = jnp.zeros((SLAB_ROWS, LANES), jnp.float32)
    slab = slab.at[SLAB_W1:SLAB_W1 + N_STATES, :H1].set(w1.astype(jnp.float32))
    slab = slab.at[SLAB_W2:SLAB_W2 + H1, :H2].set(w2.astype(jnp.float32))
    slab = slab.at[SLAB_W3:SLAB_W3 + H2, :N_ACTIONS].set(w3.astype(jnp.float32))
    slab = slab.at[SLAB_B + 0, :H1].set(b1.reshape(-1).astype(jnp.float32))
    slab = slab.at[SLAB_B + 1, :H2].set(b2.reshape(-1).astype(jnp.float32))
    slab = slab.at[SLAB_B + 2, :N_ACTIONS].set(b3.reshape(-1).astype(jnp.float32))
    return slab


def net_forward(x, param_slab):
    """x: (B, N_STATES) f32, param_slab: (272, 128) f32 -> (B, N_ACTIONS) f32."""
    B = x.shape[0]
    n_tc = _num_tensorcores()

    # --- Balanced tile selection: pick tile COUNT first, then derive TB. ----
    #  * single-TC (v5e/v6e): cap TB at 1024 rows (amortize ~0.35us/step).
    #  * multi-TC (v7x):      cap TB at 512 and force a multiple of n_tc tiles
    #                         once B >= 128 so every core gets work.
    tb_cap = 512 if n_tc > 1 else 1024
    num_tiles = max(1, _cdiv(B, tb_cap))
    if n_tc > 1 and B >= 128:
        num_tiles = _cdiv(max(num_tiles, n_tc), n_tc) * n_tc
    TB = _round_up(_cdiv(B, num_tiles), 8)
    B_pad = num_tiles * TB

    if B_pad != B:                       # skip the pad HLO when not needed
        x = jnp.pad(x, ((0, B_pad - B), (0, 0)))
    grid = (num_tiles,)

    flops = 2 * B_pad * (N_STATES * LANES + LANES * LANES + LANES * LANES)
    bytes_accessed = 4 * (B_pad * N_STATES + SLAB_ROWS * LANES
                          + B_pad * N_ACTIONS)

    out = pl.pallas_call(
        _mlp_kernel,
        out_shape=jax.ShapeDtypeStruct((B_pad, N_ACTIONS), jnp.float32),
        grid=grid,
        in_specs=[
            pl.BlockSpec((TB, N_STATES), lambda i: (i, 0)),        # batch tile
            pl.BlockSpec((SLAB_ROWS, LANES), lambda i: (0, 0)),    # pinned weights
        ],
        out_specs=pl.BlockSpec((TB, N_ACTIONS), lambda i: (i, 0)), # 20-wide out
        compiler_params=pltpu.CompilerParams(
            dimension_semantics=("parallel",)),
        cost_estimate=pl.CostEstimate(
            flops=flops, transcendentals=0, bytes_accessed=bytes_accessed),
    )(x, param_slab)

    return out if B_pad == B else out[:B]            # skip slice when exact fit


def init_params(key):
    """Deterministic init mirroring the PyTorch module:
    weights ~ N(0, 0.1), biases ~ U(-1/sqrt(fan_in), 1/sqrt(fan_in))."""
    ks = jax.random.split(key, 6)

    def lin(kw, kb, fan_in, fan_out):
        w = 0.1 * jax.random.normal(kw, (fan_in, fan_out), dtype=jnp.float32)
        bound = 1.0 / jnp.sqrt(jnp.float32(fan_in))
        b = jax.random.uniform(kb, (1, fan_out), dtype=jnp.float32,
                               minval=-bound, maxval=bound)
        return w, b

    w1, b1 = lin(ks[0], ks[1], N_STATES, H1)
    w2, b2 = lin(ks[2], ks[3], H1, H2)
    w3, b3 = lin(ks[4], ks[5], H2, N_ACTIONS)
    return w1, b1, w2, b2, w3, b3


if __name__ == "__main__":
    key = jax.random.PRNGKey(0)
    k_x, k_p = jax.random.split(key)

    B = 8
    x = jax.random.normal(k_x, (B, N_STATES), dtype=jnp.float32)
    w1, b1, w2, b2, w3, b3 = init_params(k_p)
    slab = pack_params(w1, b1, w2, b2, w3, b3)

    out = net_forward(x, slab)
    out = jax.block_until_ready(out)

    # Reference in plain JAX (f32, HIGHEST precision) for sanity.
    hp = jax.lax.Precision.HIGHEST
    ref = jnp.maximum(jnp.dot(x, w1, precision=hp) + b1, 0.0)
    ref = jnp.maximum(jnp.dot(ref, w2, precision=hp) + b2, 0.0)
    ref = jnp.dot(ref, w3, precision=hp) + b3

    assert out.shape == (B, N_ACTIONS)
    assert jnp.allclose(out, ref, atol=5e-5, rtol=1e-4)

    print("KERNEL_OK")
</pallas_src>

<mosaic_0001>
module attributes {stable_mosaic.version = 11 : i64} {
  func.func @_mlp_kernel(%arg0: i32, %arg1: memref<8x4xf32, #tpu.memory_space<vmem>>, %arg2: memref<272x128xf32, #tpu.memory_space<vmem>>, %arg3: memref<8x20xf32, #tpu.memory_space<vmem>>) attributes {dimension_semantics = [#tpu.dimension_semantics<parallel>], iteration_bounds = array<i64: 1>, scalar_prefetch = 0 : i64, scratch_operands = 0 : i64, tpu.core_type = #tpu.core_type<tc>, window_params = [{transform_indices = @transform_0, window_bounds = array<i64: 8, 4>}, {pipeline_mode = #tpu.pipeline_mode<synchronous>, transform_indices = @transform_1, window_bounds = array<i64: 272, 128>}, {transform_indices = @transform_2, window_bounds = array<i64: 8, 20>}]} {
    %c0 = arith.constant 0 : index
    %c0_0 = arith.constant 0 : index
    %0 = vector.load %arg1[%c0, %c0_0] : memref<8x4xf32, #tpu.memory_space<vmem>>, vector<8x4xf32>
    %c264 = arith.constant 264 : index
    %c0_1 = arith.constant 0 : index
    %1 = vector.load %arg2[%c264, %c0_1] : memref<272x128xf32, #tpu.memory_space<vmem>>, vector<8x128xf32>
    %2 = vector.extract_strided_slice %1 {offsets = [0, 0], sizes = [1, 128], strides = [1, 1]} : vector<8x128xf32> to vector<1x128xf32>
    %3 = vector.extract_strided_slice %1 {offsets = [1, 0], sizes = [1, 128], strides = [1, 1]} : vector<8x128xf32> to vector<1x128xf32>
    %4 = vector.extract_strided_slice %1 {offsets = [2, 0], sizes = [1, 128], strides = [1, 1]} : vector<8x128xf32> to vector<1x128xf32>
    %c0_2 = arith.constant 0 : index
    %c0_3 = arith.constant 0 : index
    %5 = vector.load %arg2[%c0_2, %c0_3] : memref<272x128xf32, #tpu.memory_space<vmem>>, vector<4x128xf32>
    %cst = arith.constant dense<0.000000e+00> : vector<8x128xf32>
    %6 = tpu.matmul %0, %5, %cst {dimension_numbers = #tpu.dot_dimension_numbers<[1], [0], [0], [1], [0, 0, 1, 1], [], []>, precision = #tpu.contract_precision<fp32>} : vector<8x4xf32>, vector<4x128xf32>, vector<8x128xf32> -> vector<8x128xf32>
    %7 = vector.broadcast %2 : vector<1x128xf32> to vector<8x128xf32>
    %8 = arith.addf %6, %7 : vector<8x128xf32>
    %cst_4 = arith.constant 0.000000e+00 : f32
    %9 = vector.broadcast %cst_4 : f32 to vector<8x128xf32>
    %10 = arith.maximumf %8, %9 : vector<8x128xf32>
    %c8 = arith.constant 8 : index
    %c0_5 = arith.constant 0 : index
    %11 = vector.load %arg2[%c8, %c0_5] : memref<272x128xf32, #tpu.memory_space<vmem>>, vector<128x128xf32>
    %cst_6 = arith.constant dense<0.000000e+00> : vector<8x128xf32>
    %12 = tpu.matmul %10, %11, %cst_6 {dimension_numbers = #tpu.dot_dimension_numbers<[1], [0], [0], [1], [0, 0, 1, 1], [], []>, precision = #tpu.contract_precision<fp32>} : vector<8x128xf32>, vector<128x128xf32>, vector<8x128xf32> -> vector<8x128xf32>
    %13 = vector.broadcast %3 : vector<1x128xf32> to vector<8x128xf32>
    %14 = arith.addf %12, %13 : vector<8x128xf32>
    %cst_7 = arith.constant 0.000000e+00 : f32
    %15 = vector.broadcast %cst_7 : f32 to vector<8x128xf32>
    %16 = arith.maximumf %14, %15 : vector<8x128xf32>
    %c136 = arith.constant 136 : index
    %c0_8 = arith.constant 0 : index
    %17 = vector.load %arg2[%c136, %c0_8] : memref<272x128xf32, #tpu.memory_space<vmem>>, vector<128x128xf32>
    %cst_9 = arith.constant dense<0.000000e+00> : vector<8x128xf32>
    %18 = tpu.matmul %16, %17, %cst_9 {dimension_numbers = #tpu.dot_dimension_numbers<[1], [0], [0], [1], [0, 0, 1, 1], [], []>, precision = #tpu.contract_precision<fp32>} : vector<8x128xf32>, vector<128x128xf32>, vector<8x128xf32> -> vector<8x128xf32>
    %19 = vector.broadcast %4 : vector<1x128xf32> to vector<8x128xf32>
    %20 = arith.addf %18, %19 : vector<8x128xf32>
    %21 = vector.extract_strided_slice %20 {offsets = [0, 0], sizes = [8, 20], strides = [1, 1]} : vector<8x128xf32> to vector<8x20xf32>
    %c0_10 = arith.constant 0 : index
    %c0_11 = arith.constant 0 : index
    %22 = vector.load %arg3[%c0_10, %c0_11] : memref<8x20xf32, #tpu.memory_space<vmem>>, vector<8x20xf32>
    tpu.vector_store %arg3[%c0_10, %c0_11], %21 {strides = array<i32>} : memref<8x20xf32, #tpu.memory_space<vmem>>, vector<8x20xf32>,
    return
  }
  func.func @transform_0(%arg0: i32) -> (i32, i32) {
    %c0_i32 = arith.constant 0 : i32
    %c0_i32_0 = arith.constant 0 : i32
    return %arg0, %c0_i32 : i32, i32
  }
  func.func @transform_1(%arg0: i32) -> (i32, i32) {
    %c0_i32 = arith.constant 0 : i32
    %c0_i32_0 = arith.constant 0 : i32
    %c0_i32_1 = arith.constant 0 : i32
    return %c0_i32, %c0_i32_0 : i32, i32
  }
  func.func @transform_2(%arg0: i32) -> (i32, i32) {
    %c0_i32 = arith.constant 0 : i32
    %c0_i32_0 = arith.constant 0 : i32
    return %arg0, %c0_i32 : i32, i32
  }
}

</mosaic_0001>

<bundles_post_ra>
// kernel: tpu_custom_call.1
= control target key start
LH: loop header
LB: loop body
LE: loop exit
PB: predicated region body
PF: predicated region fallthrough
CT: control target
= control target key end

     0   :  { %7 = vsyncpa [#allocation3], 0  ;;  %s3488_s0 = inlined_call_operand.vmem [shape: f32[8,4], index: 0, kind: input, shape index: {}]   ;;  %s3489_s1 = inlined_call_operand.hbm [shape: f32[272,128], index: 1, kind: input, shape index: {}]   ;;  %s3490_s2 = inlined_call_operand.hbm [shape: f32[8,20], index: 2, kind: output, shape index: {}]  }
   0x1   :  { %8 = vsyncpa [#allocation4], 0  ;;  %s2869_s9 = smov [#allocation2]   ;;  %s2821_s13 = scalar_lea.hbm %s3489_s1, 4352 }
   0x2   :  { %s16_s10 = sshll.u32 %s2869_s9, 4  ;;  %p2822_p0 = scmp.ne.s32.totalorder %s3489_s1, %s2821_s13  ;;  %s17_s10 = int_to_ptr.vmem [resolvable:$true] %s16_s10 }
   0x3   :  { %p2825_p1 = scmp.lt.u32.totalorder %s2821_s13, %s3489_s1 }
   0x5   :  { %p2827_p2 = pnand %p2825_p1, %p2822_p0 }
   0x7   :  { %2830 = shalt.err (!%p2827_p2)
}
   0x8   :  { %s2831_s18 = scalar_lea.vmem %s17_s10, 4352  ;;  %p2836_p4 = scmp.lt.s32.totalorder %s17_s10, %s17_s10 }
   0x9   :  { %p2832_p3 = scmp.ne.s32.totalorder %s17_s10, %s2831_s18  ;;  %p2837_p5 = scmp.lt.s32.totalorder %s2831_s18, %s2831_s18 }
   0xb   :  { %p2838_p6 = por %p2837_p5, %p2836_p4 }
   0xd   :  { %p2839_p7 = pnand %p2838_p6, %p2832_p3 }
   0xf   :  { %2842 = shalt.err (!%p2839_p7)
}
  0x10   :  { %s2870_s19 = smov 128   ;;  %s2871_s20 = smov 8  }
  0x11   :  { %22 = dma.hbm_to_vmem [thread:$0]  %s3489_s1, 4352, %s17_s10, [#allocation3], %s2870_s19, %s2870_s19, %s2871_s20  }
  0x12   :  { %2865 = dma.done.wait [#allocation3], 4352  }
  0x13   :  { %2866 = vsyncadd [#allocation3], 4294962944  ;;  %v2872_v0 = vmov 0.0   ;;  %vm2873_vm0 = vmmov 0   ;;  %vm37_vm1 = vcmask 1043456   ;;  %vm33_vm2 = vcmask 31744  }
  0x14   :  { %2059 = vmatprep.subr.mxu0 %v2872_v0  ;;  %2061 = vmatprep.mubr.msk.f32.mxu0 %vm2873_vm0, %v2872_v0  ;;  %v28_v1 = vld [vmem:[#allocation2] sm:$0xf]  ;;  %v488_v3 = vld [vmem:[#allocation2 + $0x8] sm:$0xff]  ;;  %v489_v6 = vld [vmem:[#allocation2 + $0x10] sm:$0xff]  ;;  %v2874_v33 = vmov 0.0|0.0   ;;  %vm1811_vm3 = vcmask 162816  }
  0x15   :  { %2044 = vmatprep.subr.mxu1 %v2872_v0  ;;  %2046 = vmatprep.mubr.msk.f32.mxu1 %vm2873_vm0, %v2872_v0  ;;  %v26_v2 = vld [vmem:[%s3488_s0] sm:$0xff]  ;;  %v39_v4 = vsel %vm37_vm1, %v28_v1, 0  ;;  %v509_v7 = vand.u32 4294901760, %v488_v3  ;;  %v490_v8 = vld [vmem:[#allocation2 + $0x18] sm:$0xff]  ;;  %v492_v12 = vld [vmem:[#allocation2 + $0x28] sm:$0xff]  ;;  %v512_v14 = vand.u32 4294901760, %v489_v6 }
  0x16   :  { %v35_v5 = vsel %vm33_vm2, %v26_v2, 0  ;;  %v491_v9 = vld [vmem:[#allocation2 + $0x20] sm:$0xff]  ;;  %v42_v10 = vand.u32 4294901760, %v39_v4  ;;  %v493_v13 = vld [vmem:[#allocation2 + $0x30] sm:$0xff]  ;;  %v515_v16 = vand.u32 4294901760, %v490_v8  ;;  %v521_v22 = vand.u32 4294901760, %v492_v12 }
  0x17   :  { %v107_v11 = vand.u32 4294901760, %v35_v5  ;;  %v2912_v15 = vsub.f32 %v488_v3, %v509_v7  ;;  %v518_v19 = vand.u32 4294901760, %v491_v9  ;;  %v2916_v20 = vsub.f32 %v489_v6, %v512_v14  ;;  %v494_v37 = vld [vmem:[#allocation2 + $0x38] sm:$0xff]  ;;  %v495_v38 = vld [vmem:[#allocation2 + $0x40] sm:$0xff]  ;;  %v496_v42 = vld [vmem:[#allocation2 + $0x48] sm:$0xff]  ;;  %s2875_s0 = smov [#allocation5]  }
  0x18   :  { %v119_v17 = vsub.f32 %v39_v4, %v42_v10  ;;  %2060 = vmatpush3.msra.mxu0 %v42_v10  ;;  %2045 = vmatpush3.msra.mxu1 %v42_v10  ;;  %v2918_v21 = vsub.f32 %v490_v8, %v515_v16  ;;  %v524_v23 = vand.u32 4294901760, %v493_v13  ;;  %v2922_v27 = vsub.f32 %v492_v12, %v521_v22  ;;  %v497_v43 = vld [vmem:[#allocation2 + $0x50] sm:$0xff]  ;;  %v498_v49 = vld [vmem:[#allocation2 + $0x58] sm:$0xff]  ;;  %v499_v50 = vld [vmem:[#allocation2 + $0x60] sm:$0xff]  ;;  %s1819_s1 = sshll.u32 %s2875_s0, 4  ;;  %s1820_s1 = int_to_ptr.vmem [resolvable:$true] %s1819_s1 }
  0x19   :  { %v108_v18 = vsub.f32 %v35_v5, %v107_v11  ;;  %2049 = vmatprep.subr.mxu1 %v2872_v0  ;;  %2064 = vmatprep.subr.mxu0 %v2872_v0  ;;  %v2920_v26 = vsub.f32 %v491_v9, %v518_v19  ;;  %v2938_v34 = vpack.c.bf16 %v512_v14, %v509_v7  ;;  %v527_v39 = vand.u32 4294901760, %v494_v37  ;;  %v500_v54 = vld [vmem:[#allocation2 + $0x68] sm:$0xff]  ;;  %v501_v55 = vld [vmem:[#allocation2 + $0x70] sm:$0xff]  ;;  %v502_v59 = vld [vmem:[#allocation2 + $0x78] sm:$0xff]  ;;  %s2843_s25 = scalar_lea.vmem %s1820_s1, 128  ;;  %p2848_p9 = scmp.lt.s32.totalorder %s1820_s1, %s1820_s1 }
  0x1a   :  { %v120_v25 = vand.u32 4294901760, %v119_v17  ;;  %v2924_v28 = vsub.f32 %v493_v13, %v524_v23  ;;  %v2943_v35 = vpack.c.bf16 %v518_v19, %v515_v16  ;;  %v2949_v36 = vpack.c.bf16 %v524_v23, %v521_v22  ;;  %v503_v60 = vld [vmem:[#allocation2 + $0x80] sm:$0xff]  ;;  %p2844_p8 = scmp.ne.s32.totalorder %s1820_s1, %s2843_s25  ;;  %p2849_p10 = scmp.lt.s32.totalorder %s2843_s25, %s2843_s25 }
  0x1b   :  { %v109_v24 = vand.u32 4294901760, %v108_v18  ;;  %v530_v40 = vand.u32 4294901760, %v495_v38  ;;  %v2957_v44 = vsub.f32 %v494_v37, %v527_v39  ;;  %v533_v46 = vand.u32 4294901760, %v496_v42 }
  0x1c   :  { %v121_v30 = vsub.f32 %v119_v17, %v120_v25  ;;  %v536_v47 = vand.u32 4294901760, %v497_v43  ;;  %v539_v51 = vand.u32 4294901760, %v498_v49  ;;  %v542_v52 = vand.u32 4294901760, %v499_v50  ;;  %p2850_p11 = por %p2849_p10, %p2848_p9 }
  0x1d   :  { %2062 = vmatmul.mubr.f32.vlgmr.msra.gmra.mrb[0].mxu0 %v109_v24  ;;  %v110_v29 = vsub.f32 %v108_v18, %v109_v24  ;;  %v2954_v41 = vpack.c.bf16 %v530_v40, %v527_v39  ;;  %v2959_v45 = vsub.f32 %v495_v38, %v530_v40  ;;  %v545_v56 = vand.u32 4294901760, %v500_v54 }
  0x1e   :  { %2065 = vmatpush3.msra.mxu0 %v120_v25  ;;  %2066 = vmatprep.mubr.msk.f32.mxu0 %vm2873_vm0, %v2872_v0  ;;  %v122_v32 = vand.u32 4294901760, %v121_v30  ;;  %v2962_v48 = vpack.c.bf16 %v536_v47, %v533_v46  ;;  %v2966_v53 = vpack.c.bf16 %v542_v52, %v539_v51  ;;  %v548_v57 = vand.u32 4294901760, %v501_v55  ;;  %p2851_p12 = pnand %p2850_p11, %p2844_p8 }
  0x1f   :  { %v111_v31 = vand.u32 4294901760, %v110_v29  ;;  %2069 = vmatprep.subr.mxu0 %v2872_v0  ;;  %v551_v61 = vand.u32 4294901760, %v502_v59  ;;  %v554_v62 = vand.u32 4294901760, %v503_v60  ;;  %v602_v63 = vand.u32 4294901760, %v2912_v15 }
  0x20   :  { %v2970_v58 = vpack.c.bf16 %v548_v57, %v545_v56  ;;  %v609_v1 = vand.u32 4294901760, %v2916_v20  ;;  %v2975_v2 = vsub.f32 %v496_v42, %v533_v46  ;;  %v2977_v3 = vsub.f32 %v497_v43, %v536_v47 }
  0x21   :  { %2047 = vmatmul.mubr.f32.vlgmr.msra.gmra.mrb[0].mxu1 %v111_v31  ;;  %v2979_v4 = vsub.f32 %v498_v49, %v539_v51  ;;  %v2981_v5 = vsub.f32 %v499_v50, %v542_v52  ;;  %v2984_v6 = vsub.f32 %v500_v54, %v545_v56  ;;  %v2986_v7 = vsub.f32 %v501_v55, %v548_v57 }
  0x22   :  { %2050 = vmatpush3.msra.mxu1 %v122_v32  ;;  %2051 = vmatprep.mubr.msk.f32.mxu1 %vm2873_vm0, %v2872_v0  ;;  %v2988_v8 = vpack.c.bf16 %v554_v62, %v551_v61  ;;  %v2990_v9 = vsub.f32 %v502_v59, %v551_v61  ;;  %v610_v12 = vsub.f32 %v2916_v20, %v609_v1  ;;  %v3504_v13 = vand.u32 4294901760, %v2918_v21 }
  0x23   :  { %2054 = vmatprep.subr.mxu1 %v2872_v0  ;;  %v3503_v14 = vand.u32 4294901760, %v2920_v26  ;;  %v3502_v25 = vand.u32 4294901760, %v2922_v27  ;;  %v3501_v29 = vand.u32 4294901760, %v2924_v28  ;;  %v3500_v39 = vand.u32 4294901760, %v2957_v44 }
  0x24   :  { %v3499_v40 = vand.u32 4294901760, %v2959_v45  ;;  %v3498_v50 = vand.u32 4294901760, %v2975_v2  ;;  %v3497_v51 = vand.u32 4294901760, %v2977_v3  ;;  %v3496_v59 = vand.u32 4294901760, %v2979_v4 }
  0x25   :  { %2067 = vmatmul.mubr.f32.vlgmr.msra.gmra.mrb[0].mxu0 %v107_v11  ;;  %v624_v19 = vsub.f32 %v2920_v26, %v3503_v14  ;;  %v631_v31 = vsub.f32 %v2922_v27, %v3502_v25  ;;  %v638_v32 = vsub.f32 %v2924_v28, %v3501_v29  ;;  %v645_v43 = vsub.f32 %v2957_v44, %v3500_v39 }
  0x26   :  { %2070 = vmatpush3.msra.mxu0 %v42_v10  ;;  %2071 = vmatprep.mubr.msk.f32.mxu0 %vm2873_vm0, %v2872_v0  ;;  %v2992_v10 = vsub.f32 %v503_v60, %v554_v62  ;;  %v652_v46 = vsub.f32 %v2959_v45, %v3499_v40  ;;  %v659_v54 = vsub.f32 %v2975_v2, %v3498_v50  ;;  %v3495_v60 = vand.u32 4294901760, %v2981_v5 }
  0x27   :  { %2638 = vmatprep.subr.bf16.mxu0 %v2874_v33  ;;  %v625_v24 = vand.u32 4294901760, %v624_v19  ;;  %v632_v37 = vand.u32 4294901760, %v631_v31  ;;  %v639_v38 = vand.u32 4294901760, %v638_v32  ;;  %v646_v47 = vand.u32 4294901760, %v645_v43 }
  0x28   :  { %v653_v49 = vand.u32 4294901760, %v652_v46  ;;  %v666_v55 = vsub.f32 %v2977_v3, %v3497_v51  ;;  %v660_v56 = vand.u32 4294901760, %v659_v54  ;;  %v673_v62 = vsub.f32 %v2979_v4, %v3496_v59 }
  0x29   :  { %2052 = vmatmul.mubr.f32.vlgmr.msra.gmra.mrb[0].mxu1 %v107_v11  ;;  %v3024_v42 = vpack.c.bf16 %v639_v38, %v632_v37  ;;  %v3492_v37 = vand.u32 4294901760, %v2990_v9  ;;  %v3491_v38 = vand.u32 4294901760, %v2992_v10 }
  0x2a   :  { %2055 = vmatpush3.msra.mxu1 %v119_v17  ;;  %2056 = vmatprep.mubr.msk.f32.mxu1 %vm2873_vm0, %v2872_v0  ;;  %v611_v17 = vand.u32 4294901760, %v610_v12  ;;  %v2528_v52 = vpack.c.bf16 %v653_v49, %v646_v47  ;;  %v667_v57 = vand.u32 4294901760, %v666_v55  ;;  %v674_v12 = vand.u32 4294901760, %v673_v62 }
  0x2b   :  { %2494 = vmatprep.subr.bf16.mxu1 %v2874_v33  ;;  %v701_v46 = vsub.f32 %v2990_v9, %v3492_v37  ;;  %v708_v47 = vsub.f32 %v2992_v10, %v3491_v38  ;;  %v2549_v62 = vpack.c.bf16 %v2924_v28, %v2922_v27 }
  0x2c   :  { %v2531_v61 = vpack.c.bf16 %v667_v57, %v660_v56  ;;  %v2543_v56 = vpack.c.bf16 %v2916_v20, %v2912_v15  ;;  %v2546_v57 = vpack.c.bf16 %v2920_v26, %v2918_v21  ;;  %v3515_v20 = vand.u32 4294901760, %v2924_v28 }
  0x2d   :  { %2072 = vmatmul.mubr.f32.vlgmr.msra.gmra.mrb[0].mxu0 %v107_v11  ;;  %v603_v11 = vsub.f32 %v2912_v15, %v602_v63  ;;  %v702_v49 = vand.u32 4294901760, %v701_v46  ;;  %v709_v54 = vand.u32 4294901760, %v708_v47  ;;  %v3083_v47 = vld [vmem:[#allocation2 + $0x108] sm:$0xff]  ;;  %v3514_v15 = vand.u32 4294901760, %v2922_v27 }
  0x2e   :  { %2316 = vmatprep.mubr.msk.f32.mxu0 %vm2873_vm0, %v2872_v0  ;;  %v3520_v27 = vand.u32 4294901760, %v2979_v4  ;;  %v3521_v28 = vand.u32 4294901760, %v2981_v5 }
  0x2f   :  { %v604_v16 = vand.u32 4294901760, %v603_v11  ;;  %v680_v11 = vsub.f32 %v2981_v5, %v3495_v60  ;;  %v2540_v55 = vpack.c.bf16 %v709_v54, %v702_v49 }
  0x31   :  { %2057 = vmatmul.mubr.f32.vlgmr.msra.gmra.mrb[0].mxu1 %v108_v18  ;;  %v617_v18 = vsub.f32 %v2918_v21, %v3504_v13  ;;  %v3010_v22 = vpack.c.bf16 %v611_v17, %v604_v16  ;;  %v681_v16 = vand.u32 4294901760, %v680_v11  ;;  %v3494_v17 = vand.u32 4294901760, %v2984_v6 }
  0x32   :  { %2496 = vmatpush3.bf16.msra.mxu1 %v2938_v34  ;;  %2106 = vmatprep.mubr.msk.f32.mxu1 %vm2873_vm0, %v2872_v0  ;;  %v2552_v11 = vpack.c.bf16 %v2959_v45, %v2957_v44 }
  0x33   :  { %2497 = vmatprep.subr.bf16.mxu1 %v2874_v33  ;;  %v618_v23 = vand.u32 4294901760, %v617_v18  ;;  %v3493_v18 = vand.u32 4294901760, %v2986_v7  ;;  %v2534_v19 = vpack.c.bf16 %v681_v16, %v674_v12  ;;  %v2555_v12 = vpack.c.bf16 %v2977_v3, %v2975_v2 }
  0x34   :  { %v2558_v16 = vpack.c.bf16 %v2981_v5, %v2979_v4  ;;  %v1163_v5 = vld [vmem:[#allocation2 + $0xf0] sm:$0xff] }
  0x35   :  { %v3014_v30 = vpack.c.bf16 %v625_v24, %v618_v23  ;;  %v687_v23 = vsub.f32 %v2984_v6, %v3494_v17  ;;  %v694_v24 = vsub.f32 %v2986_v7, %v3493_v18 }
  0x36   :  { %2499 = vmatpush3.bf16.msra.mxu1 %v2943_v35 }
  0x37   :  { %2500 = vmatprep.subr.bf16.mxu1 %v2874_v33  ;;  %v688_v31 = vand.u32 4294901760, %v687_v23  ;;  %v695_v32 = vand.u32 4294901760, %v694_v24  ;;  %v2561_v23 = vpack.c.bf16 %v2986_v7, %v2984_v6  ;;  %v2564_v24 = vpack.c.bf16 %v2992_v10, %v2990_v9 }
  0x39   :  { %v2537_v43 = vpack.c.bf16 %v695_v32, %v688_v31  ;;  %v29_v31 = vlaneseq }
  0x3a   :  { %2502 = vmatpush3.bf16.msra.mxu1 %v2949_v36 }
  0x3b   :  { %2503 = vmatprep.subr.bf16.mxu1 %v2874_v33  ;;  %v3080_v32 = vshrl.u32 %v29_v31, 7 }
  0x3d   :  { %v31_v46 = vsub.s32 0, %v3080_v32 }
  0x3e   :  { %2505 = vmatpush3.bf16.msra.mxu1 %v2954_v41 }
  0x3f   :  { %2506 = vmatprep.subr.bf16.mxu1 %v2874_v33  ;;  %v32_v38 = vrot.slane %v3083_v47, %v31_v46 }
  0x42   :  { %2508 = vmatpush3.bf16.msra.mxu1 %v2962_v48 }
  0x43   :  { %2509 = vmatprep.subr.bf16.mxu1 %v2874_v33 }
  0x46   :  { %2511 = vmatpush3.bf16.msra.mxu1 %v2966_v53 }
  0x47   :  { %2512 = vmatprep.subr.bf16.mxu1 %v2874_v33 }
  0x4a   :  { %2514 = vmatpush3.bf16.msra.mxu1 %v2970_v58 }
  0x4b   :  { %2515 = vmatprep.subr.bf16.mxu1 %v2874_v33 }
  0x4e   :  { %2517 = vmatpush3.bf16.msra.mxu1 %v2988_v8 }
  0x4f   :  { %2518 = vmatprep.subr.bf16.mxu1 %v2874_v33 }
 0x100   :  { %v483_v49 = vpop.f32.mrb[0].mxu0 }
 0x101   :  { %v2073_v54 = vpop.f32.mrb[1].mxu0 }
 0x102   :  { %v1159_v54 = vld [vmem:[#allocation2 + $0xd0] sm:$0xff] }
 0x104   :  { %v263_v37 = vpop.f32.mrb[0].mxu1 }
 0x105   :  { %v2782_v18 = vadd.f32 %v263_v37, %v32_v38  ;;  %v2058_v17 = vpop.f32.mrb[1].mxu1  ;;  %v1156_v37 = vld [vmem:[#allocation2 + $0xb8] sm:$0xff]  ;;  %v1157_v38 = vld [vmem:[#allocation2 + $0xc0] sm:$0xff] }
 0x107   :  { %v2783_v60 = vadd.f32 %v2782_v18, %v483_v49 }
 0x109   :  { %v487_v59 = vmax.f32 %v2783_v60, 0.0  ;;  %v1154_v60 = vld [vmem:[#allocation2 + $0xa8] sm:$0xff] }
 0x10a   :  { %v1183_v18 = vand.u32 4294901760, %v1154_v60 }
 0x10b   :  { %v3086_v51 = vand.u32 4294901760, %v487_v59 }
 0x10c   :  { %v3124_v14 = vsub.f32 %v1154_v60, %v1183_v18 }
 0x10d   :  { %v3089_v50 = vsub.f32 %v487_v59, %v3086_v51 }
 0x10f   :  { %v591_v31 = vand.u32 4294901760, %v3089_v50 }
 0x111   :  { %v592_v40 = vsub.f32 %v3089_v50, %v591_v31 }
 0x113   :  { %v593_v39 = vand.u32 4294901760, %v592_v40 }
 0x115   :  { %2107 = vmatmul.mubr.f32.vlgmr.msra.gmra.mrb[2].mxu1 %v593_v39  ;;  %v1152_v39 = vld [vmem:[#allocation2 + $0x98] sm:$0xff] }
 0x116   :  { %2520 = vmatpush3.bf16.msra.mxu1 %v3010_v22  ;;  %2141 = vmatprep.mubr.msk.f32.mxu1 %vm2873_vm0, %v2872_v0  ;;  %v1150_v22 = vld [vmem:[#allocation2 + $0x88] sm:$0xff]  ;;  %v1177_v59 = vand.u32 4294901760, %v1152_v39 }
 0x117   :  { %2521 = vmatprep.subr.bf16.mxu1 %v2874_v33  ;;  %v1171_v40 = vand.u32 4294901760, %v1150_v22 }
 0x118   :  { %v3118_v49 = vsub.f32 %v1152_v39, %v1177_v59  ;;  %v1198_v39 = vand.u32 4294901760, %v1159_v54 }
 0x11a   :  { %2523 = vmatpush3.bf16.msra.mxu1 %v3014_v30  ;;  %v1151_v30 = vld [vmem:[#allocation2 + $0x90] sm:$0xff]  ;;  %v3140_v60 = vsub.f32 %v1159_v54, %v1198_v39 }
 0x11b   :  { %2524 = vmatprep.subr.bf16.mxu1 %v2874_v33 }
 0x11e   :  { %2526 = vmatpush3.bf16.msra.mxu1 %v3024_v42  ;;  %v1174_v42 = vand.u32 4294901760, %v1151_v30 }
 0x11f   :  { %2527 = vmatprep.subr.bf16.mxu1 %v2874_v33 }
 0x120   :  { %v3116_v46 = vsub.f32 %v1151_v30, %v1174_v42  ;;  %v1192_v30 = vand.u32 4294901760, %v1157_v38 }
 0x122   :  { %2529 = vmatpush3.bf16.msra.mxu1 %v2528_v52  ;;  %v1153_v52 = vld [vmem:[#allocation2 + $0xa0] sm:$0xff] }
 0x123   :  { %2530 = vmatprep.subr.bf16.mxu1 %v2874_v33  ;;  %v1180_v17 = vand.u32 4294901760, %v1153_v52 }
 0x125   :  { %v3120_v29 = vpack.c.bf16 %v1180_v17, %v1177_v59  ;;  %v3122_v25 = vsub.f32 %v1153_v52, %v1180_v17  ;;  %v3136_v52 = vsub.f32 %v1157_v38, %v1192_v30  ;;  %v2606_v17 = vpack.c.bf16 %v3521_v28, %v3520_v27 }
 0x126   :  { %2532 = vmatpush3.bf16.msra.mxu1 %v2531_v61  ;;  %v1155_v61 = vld [vmem:[#allocation2 + $0xb0] sm:$0xff] }
 0x127   :  { %2533 = vmatprep.subr.bf16.mxu1 %v2874_v33 }
 0x12a   :  { %2535 = vmatpush3.bf16.msra.mxu1 %v2534_v19  ;;  %v1186_v19 = vand.u32 4294901760, %v1155_v61 }
 0x12b   :  { %2536 = vmatprep.subr.bf16.mxu1 %v2874_v33 }
 0x12c   :  { %v3130_v13 = vsub.f32 %v1155_v61, %v1186_v19 }
 0x12e   :  { %2538 = vmatpush3.bf16.msra.mxu1 %v2537_v43  ;;  %v1158_v43 = vld [vmem:[#allocation2 + $0xc8] sm:$0xff] }
 0x12f   :  { %2539 = vmatprep.subr.bf16.mxu1 %v2874_v33 }
 0x132   :  { %2541 = vmatpush3.bf16.msra.mxu1 %v2540_v55  ;;  %v3112_v55 = vpack.c.bf16 %v1174_v42, %v1171_v40 }
 0x133   :  { %2542 = vmatprep.subr.bf16.mxu1 %v2874_v33 }
 0x134   :  { %2640 = vmatpush3.bf16.msra.mxu0 %v3112_v55 }
 0x135   :  { %2142 = vmatmul.mubr.f32.vlgmr.msra.gmra.mrb[2].mxu1 %v3086_v51  ;;  %2641 = vmatprep.subr.bf16.mxu0 %v2874_v33 }
 0x136   :  { %2544 = vmatpush3.bf16.msra.mxu1 %v2543_v56  ;;  %2176 = vmatprep.mubr.msk.f32.mxu1 %vm2873_vm0, %v2872_v0  ;;  %v3114_v56 = vsub.f32 %v1150_v22, %v1171_v40  ;;  %v1189_v22 = vand.u32 4294901760, %v1156_v37  ;;  %v1195_v40 = vand.u32 4294901760, %v1158_v43 }
 0x137   :  { %2545 = vmatprep.subr.bf16.mxu1 %v2874_v33 }
 0x138   :  { %v3134_v42 = vsub.f32 %v1156_v37, %v1189_v22  ;;  %v3138_v59 = vsub.f32 %v1158_v43, %v1195_v40  ;;  %2643 = vmatpush3.bf16.msra.mxu0 %v3120_v29  ;;  %v3154_v61 = vpack.c.bf16 %v1192_v30, %v1189_v22  ;;  %v1271_v37 = vand.u32 4294901760, %v3116_v46 }
 0x139   :  { %2644 = vmatprep.subr.bf16.mxu0 %v2874_v33 }
 0x13a   :  { %2547 = vmatpush3.bf16.msra.mxu1 %v2546_v57  ;;  %v3146_v57 = vpack.c.bf16 %v1186_v19, %v1183_v18  ;;  %v1272_v54 = vsub.f32 %v3116_v46, %v1271_v37 }
 0x13b   :  { %2548 = vmatprep.subr.bf16.mxu1 %v2874_v33 }
 0x13c   :  { %2646 = vmatpush3.bf16.msra.mxu0 %v3146_v57 }
 0x13d   :  { %2647 = vmatprep.subr.bf16.mxu0 %v2874_v33 }
 0x13e   :  { %2550 = vmatpush3.bf16.msra.mxu1 %v2549_v62  ;;  %v3162_v62 = vpack.c.bf16 %v1198_v39, %v1195_v40 }
 0x13f   :  { %2551 = vmatprep.subr.bf16.mxu1 %v2874_v33 }
 0x140   :  { %2649 = vmatpush3.bf16.msra.mxu0 %v3154_v61 }
 0x141   :  { %2650 = vmatprep.subr.bf16.mxu0 %v2874_v33 }
 0x142   :  { %2553 = vmatpush3.bf16.msra.mxu1 %v2552_v11  ;;  %v2591_v11 = vpack.c.bf16 %v609_v1, %v602_v63  ;;  %v2597_v63 = vpack.c.bf16 %v3515_v20, %v3514_v15  ;;  %v3516_v1 = vand.u32 4294901760, %v2957_v44  ;;  %v3522_v44 = vand.u32 4294901760, %v2984_v6 }
 0x143   :  { %2554 = vmatprep.subr.bf16.mxu1 %v2874_v33  ;;  %v1210_v6 = vand.u32 4294901760, %v1163_v5  ;;  %v1278_v15 = vand.u32 4294901760, %v3118_v49  ;;  %v1285_v20 = vand.u32 4294901760, %v3122_v25 }
 0x144   :  { %2652 = vmatpush3.bf16.msra.mxu0 %v3162_v62 }
 0x145   :  { %2653 = vmatprep.subr.bf16.mxu0 %v2874_v33  ;;  %v3286_v39 = vsub.f32 %v1163_v5, %v1210_v6 }
 0x146   :  { %2556 = vmatpush3.bf16.msra.mxu1 %v2555_v12  ;;  %v3512_v12 = vand.u32 4294901760, %v2918_v21  ;;  %v3517_v21 = vand.u32 4294901760, %v2959_v45  ;;  %v3523_v45 = vand.u32 4294901760, %v2986_v7  ;;  %v1164_v7 = vld [vmem:[#allocation2 + $0xf8] sm:$0xff] }
 0x147   :  { %2557 = vmatprep.subr.bf16.mxu1 %v2874_v33 }
 0x148   :  { %v2609_v18 = vpack.c.bf16 %v3523_v45, %v3522_v44 }
 0x14a   :  { %2559 = vmatpush3.bf16.msra.mxu1 %v2558_v16  ;;  %v3513_v16 = vand.u32 4294901760, %v2920_v26  ;;  %v2600_v26 = vpack.c.bf16 %v3517_v21, %v3516_v1  ;;  %v1279_v1 = vsub.f32 %v3118_v49, %v1278_v15  ;;  %v1286_v21 = vsub.f32 %v3122_v25, %v1285_v20 }
 0x14b   :  { %2560 = vmatprep.subr.bf16.mxu1 %v2874_v33 }
 0x14e   :  { %2562 = vmatpush3.bf16.msra.mxu1 %v2561_v23  ;;  %v2594_v23 = vpack.c.bf16 %v3513_v16, %v3512_v12 }
 0x14f   :  { %2563 = vmatprep.subr.bf16.mxu1 %v2874_v33 }
 0x152   :  { %2565 = vmatpush3.bf16.msra.mxu1 %v2564_v24  ;;  %v3519_v24 = vand.u32 4294901760, %v2977_v3  ;;  %v3525_v3 = vand.u32 4294901760, %v2992_v10 }
 0x153   :  { %2566 = vmatprep.subr.bf16.mxu1 %v2874_v33 }
 0x155   :  { %2177 = vmatmul.mubr.f32.vlgmr.msra.gmra.mrb[2].mxu1 %v3089_v50  ;;  %v3518_v50 = vand.u32 4294901760, %v2975_v2  ;;  %v3524_v2 = vand.u32 4294901760, %v2990_v9  ;;  %v1213_v9 = vand.u32 4294901760, %v1164_v7 }
 0x156   :  { %2568 = vmatpush3.bf16.msra.mxu1 %v2938_v34  ;;  %2211 = vmatprep.mubr.msk.f32.mxu1 %vm2873_vm0, %v2872_v0 }
 0x157   :  { %2569 = vmatprep.subr.bf16.mxu1 %v2874_v33  ;;  %v2612_v19 = vpack.c.bf16 %v3525_v3, %v3524_v2  ;;  %v1313_v2 = vand.u32 4294901760, %v3136_v52 }
 0x15a   :  { %2571 = vmatpush3.bf16.msra.mxu1 %v2943_v35 }
 0x15b   :  { %2572 = vmatprep.subr.bf16.mxu1 %v2874_v33 }
 0x15e   :  { %2574 = vmatpush3.bf16.msra.mxu1 %v2949_v36 }
 0x15f   :  { %2575 = vmatprep.subr.bf16.mxu1 %v2874_v33 }
 0x162   :  { %2577 = vmatpush3.bf16.msra.mxu1 %v2954_v41 }
 0x163   :  { %2578 = vmatprep.subr.bf16.mxu1 %v2874_v33 }
 0x166   :  { %2580 = vmatpush3.bf16.msra.mxu1 %v2962_v48 }
 0x167   :  { %2581 = vmatprep.subr.bf16.mxu1 %v2874_v33 }
 0x16a   :  { %2583 = vmatpush3.bf16.msra.mxu1 %v2966_v53 }
 0x16b   :  { %2584 = vmatprep.subr.bf16.mxu1 %v2874_v33 }
 0x16e   :  { %2586 = vmatpush3.bf16.msra.mxu1 %v2970_v58 }
 0x16f   :  { %2587 = vmatprep.subr.bf16.mxu1 %v2874_v33 }
 0x172   :  { %2589 = vmatpush3.bf16.msra.mxu1 %v2988_v8 }
 0x173   :  { %2590 = vmatprep.subr.bf16.mxu1 %v2874_v33 }
 0x175   :  { %2212 = vmatmul.mubr.f32.vlgmr.msra.gmra.mrb[2].mxu1 %v591_v31  ;;  %v2603_v31 = vpack.c.bf16 %v3519_v24, %v3518_v50  ;;  %v1299_v50 = vand.u32 4294901760, %v3130_v13  ;;  %v1280_v24 = vand.u32 4294901760, %v1279_v1 }
 0x176   :  { %2592 = vmatpush3.bf16.msra.mxu1 %v2591_v11  ;;  %2246 = vmatprep.mubr.msk.f32.mxu1 %vm2873_vm0, %v2872_v0  ;;  %v3289_v11 = vsub.f32 %v1164_v7, %v1213_v9 }
 0x177   :  { %2593 = vmatprep.subr.bf16.mxu1 %v2874_v33  ;;  %v1300_v28 = vsub.f32 %v3130_v13, %v1299_v50 }
 0x179   :  { %v1301_v45 = vand.u32 4294901760, %v1300_v28 }
 0x17a   :  { %2595 = vmatpush3.bf16.msra.mxu1 %v2594_v23  ;;  %v1273_v23 = vand.u32 4294901760, %v1272_v54 }
 0x17b   :  { %2596 = vmatprep.subr.bf16.mxu1 %v2874_v33 }
 0x17e   :  { %2598 = vmatpush3.bf16.msra.mxu1 %v2597_v63 }
 0x17f   :  { %2599 = vmatprep.subr.bf16.mxu1 %v2874_v33 }
 0x182   :  { %2601 = vmatpush3.bf16.msra.mxu1 %v2600_v26  ;;  %v1292_v26 = vand.u32 4294901760, %v3124_v14 }
 0x183   :  { %2602 = vmatprep.subr.bf16.mxu1 %v2874_v33 }
 0x184   :  { %v1293_v27 = vsub.f32 %v3124_v14, %v1292_v26 }
 0x186   :  { %2604 = vmatpush3.bf16.msra.mxu1 %v2603_v31  ;;  %v1287_v31 = vand.u32 4294901760, %v1286_v21  ;;  %v1294_v44 = vand.u32 4294901760, %v1293_v27 }
 0x187   :  { %2605 = vmatprep.subr.bf16.mxu1 %v2874_v33 }
 0x188   :  { %v2669_v3 = vpack.c.bf16 %v1301_v45, %v1294_v44 }
 0x18a   :  { %2607 = vmatpush3.bf16.msra.mxu1 %v2606_v17  ;;  %v2666_v17 = vpack.c.bf16 %v1287_v31, %v1280_v24  ;;  %v3507_v24 = vand.u32 4294901760, %v3286_v39 }
 0x18b   :  { %2608 = vmatprep.subr.bf16.mxu1 %v2874_v33 }
 0x18c   :  { %v1356_v28 = vsub.f32 %v3286_v39, %v3507_v24 }
 0x18e   :  { %2610 = vmatpush3.bf16.msra.mxu1 %v2609_v18  ;;  %v1306_v18 = vand.u32 4294901760, %v3134_v42  ;;  %v1357_v45 = vand.u32 4294901760, %v1356_v28 }
 0x18f   :  { %2611 = vmatprep.subr.bf16.mxu1 %v2874_v33 }
 0x192   :  { %2613 = vmatpush3.bf16.msra.mxu1 %v2612_v19  ;;  %v1307_v19 = vsub.f32 %v3134_v42, %v1306_v18 }
 0x193   :  { %2614 = vmatprep.subr.bf16.mxu1 %v2874_v33 }
 0x195   :  { %2247 = vmatmul.mubr.f32.vlgmr.msra.gmra.mrb[2].mxu1 %v3086_v51 }
 0x196   :  { %2616 = vmatpush3.bf16.msra.mxu1 %v2938_v34  ;;  %2281 = vmatprep.mubr.msk.f32.mxu1 %vm2873_vm0, %v2872_v0  ;;  %v1160_v34 = vld [vmem:[#allocation2 + $0xd8] sm:$0xff] }
 0x197   :  { %2617 = vmatprep.subr.bf16.mxu1 %v2874_v33 }
 0x19a   :  { %2619 = vmatpush3.bf16.msra.mxu1 %v2943_v35  ;;  %v1161_v35 = vld [vmem:[#allocation2 + $0xe0] sm:$0xff] }
 0x19b   :  { %2620 = vmatprep.subr.bf16.mxu1 %v2874_v33 }
 0x19e   :  { %2622 = vmatpush3.bf16.msra.mxu1 %v2949_v36  ;;  %v1201_v36 = vand.u32 4294901760, %v1160_v34 }
 0x19f   :  { %2623 = vmatprep.subr.bf16.mxu1 %v2874_v33 }
 0x1a0   :  { %v3280_v22 = vsub.f32 %v1160_v34, %v1201_v36  ;;  %v1314_v34 = vsub.f32 %v3136_v52, %v1313_v2 }
 0x1a2   :  { %2625 = vmatpush3.bf16.msra.mxu1 %v2954_v41  ;;  %v1204_v41 = vand.u32 4294901760, %v1161_v35 }
 0x1a3   :  { %2626 = vmatprep.subr.bf16.mxu1 %v2874_v33 }
 0x1a4   :  { %v3262_v4 = vpack.c.bf16 %v1204_v41, %v1201_v36  ;;  %v3282_v30 = vsub.f32 %v1161_v35, %v1204_v41  ;;  %v1308_v35 = vand.u32 4294901760, %v1307_v19  ;;  %v1315_v36 = vand.u32 4294901760, %v1314_v34 }
 0x1a5   :  { %v1320_v41 = vand.u32 4294901760, %v3138_v59  ;;  %v3506_v19 = vand.u32 4294901760, %v3289_v11 }
 0x1a6   :  { %2628 = vmatpush3.bf16.msra.mxu1 %v2962_v48  ;;  %v1162_v48 = vld [vmem:[#allocation2 + $0xe8] sm:$0xff]  ;;  %2655 = vmatpush3.bf16.msra.mxu0 %v3262_v4  ;;  %v2672_v5 = vpack.c.bf16 %v1315_v36, %v1308_v35  ;;  %v2702_v28 = vpack.c.bf16 %v3282_v30, %v3280_v22 }
 0x1a7   :  { %2629 = vmatprep.subr.bf16.mxu1 %v2874_v33  ;;  %2656 = vmatprep.subr.bf16.mxu0 %v2874_v33  ;;  %v1363_v36 = vsub.f32 %v3289_v11, %v3506_v19 }
 0x1aa   :  { %2631 = vmatpush3.bf16.msra.mxu1 %v2966_v53  ;;  %v1207_v53 = vand.u32 4294901760, %v1162_v48 }
 0x1ab   :  { %2632 = vmatprep.subr.bf16.mxu1 %v2874_v33 }
 0x1ac   :  { %v3284_v40 = vsub.f32 %v1162_v48, %v1207_v53  ;;  %v3511_v48 = vand.u32 4294901760, %v3140_v60 }
 0x1ae   :  { %2634 = vmatpush3.bf16.msra.mxu1 %v2970_v58  ;;  %v3266_v58 = vpack.c.bf16 %v1210_v6, %v1207_v53  ;;  %v1321_v53 = vsub.f32 %v3138_v59, %v1320_v41  ;;  %v1328_v6 = vsub.f32 %v3140_v60, %v3511_v48  ;;  %v3508_v21 = vand.u32 4294901760, %v3284_v40 }
 0x1af   :  { %2635 = vmatprep.subr.bf16.mxu1 %v2874_v33 }
 0x1b0   :  { %2658 = vmatpush3.bf16.msra.mxu0 %v3266_v58  ;;  %v1322_v7 = vand.u32 4294901760, %v1321_v53  ;;  %v1349_v27 = vsub.f32 %v3284_v40, %v3508_v21 }
 0x1b1   :  { %2659 = vmatprep.subr.bf16.mxu0 %v2874_v33 }
 0x1b2   :  { %2637 = vmatpush3.bf16.msra.mxu1 %v2988_v8  ;;  %v1165_v8 = vld [vmem:[#allocation2 + $0x100] sm:$0xff]  ;;  %v1350_v44 = vand.u32 4294901760, %v1349_v27  ;;  %v2699_v27 = vpack.c.bf16 %v3140_v60, %v3138_v59  ;;  %v3531_v59 = vand.u32 4294901760, %v3289_v11 }
 0x1b3   :  { %v1216_v10 = vand.u32 4294901760, %v1165_v8 }
 0x1b4   :  { %v2681_v35 = vpack.c.bf16 %v1357_v45, %v1350_v44  ;;  %v2705_v44 = vpack.c.bf16 %v3286_v39, %v3284_v40 }
 0x1b5   :  { %2282 = vmatmul.mubr.f32.vlgmr.msra.gmra.mrb[2].mxu1 %v3086_v51  ;;  %v1264_v51 = vand.u32 4294901760, %v3114_v56  ;;  %v3272_v38 = vpack.c.bf16 %v1216_v10, %v1213_v9  ;;  %v3291_v12 = vsub.f32 %v1165_v8, %v1216_v10  ;;  %v1329_v8 = vand.u32 4294901760, %v1328_v6 }
 0x1b6   :  { %v3510_v9 = vand.u32 4294901760, %v3280_v22  ;;  %v3509_v10 = vand.u32 4294901760, %v3282_v30  ;;  %v1364_v6 = vand.u32 4294901760, %v1363_v36  ;;  %v506_v36 = vsub.s32 1, %v3080_v32 }
 0x1b7   :  { %v1265_v43 = vsub.f32 %v3114_v56, %v1264_v51  ;;  %2661 = vmatpush3.bf16.msra.mxu0 %v3272_v38  ;;  %v3505_v34 = vand.u32 4294901760, %v3291_v12  ;;  %v2708_v45 = vpack.c.bf16 %v3291_v12, %v3289_v11 }
 0x1b8   :  { %2662 = vmatprep.subr.bf16.mxu0 %v2874_v33  ;;  %v1335_v54 = vsub.f32 %v3280_v22, %v3510_v9 }
 0x1b9   :  { %v1266_v16 = vand.u32 4294901760, %v1265_v43  ;;  %v2675_v43 = vpack.c.bf16 %v1329_v8, %v1322_v7  ;;  %v1370_v53 = vsub.f32 %v3291_v12, %v3505_v34 }
 0x1bb   :  { %v3296_v63 = vpack.c.bf16 %v1273_v23, %v1266_v16  ;;  %v1342_v16 = vsub.f32 %v3282_v30, %v3509_v10  ;;  %v1336_v23 = vand.u32 4294901760, %v1335_v54  ;;  %v1371_v7 = vand.u32 4294901760, %v1370_v53 }
 0x1bc   :  { %v2687_v54 = vpack.c.bf16 %v3116_v46, %v3114_v56  ;;  %v507_v53 = vrot.slane %v3083_v47, %v506_v36  ;;  %v2741_v56 = vpack.c.bf16 %v1299_v50, %v1292_v26  ;;  %v3526_v46 = vand.u32 4294901760, %v3140_v60 }
 0x1bd   :  { %v1343_v1 = vand.u32 4294901760, %v1342_v16  ;;  %v2684_v8 = vpack.c.bf16 %v1371_v7, %v1364_v6  ;;  %v2690_v16 = vpack.c.bf16 %v3122_v25, %v3118_v49  ;;  %v2744_v25 = vpack.c.bf16 %v1313_v2, %v1306_v18 }
 0x1be   :  { %v2747_v49 = vpack.c.bf16 %v3526_v46, %v1320_v41  ;;  %v3532_v60 = vand.u32 4294901760, %v3291_v12 }
 0x1bf   :  { %v2678_v31 = vpack.c.bf16 %v1343_v1, %v1336_v23  ;;  %v2693_v23 = vpack.c.bf16 %v3130_v13, %v3124_v14  ;;  %v2696_v1 = vpack.c.bf16 %v3136_v52, %v3134_v42  ;;  %v3527_v13 = vand.u32 4294901760, %v3280_v22 }
 0x1c0   :  { %v3528_v14 = vand.u32 4294901760, %v3282_v30  ;;  %v3529_v42 = vand.u32 4294901760, %v3284_v40  ;;  %v3530_v52 = vand.u32 4294901760, %v3286_v39 }
 0x288   :  { %v1145_v6 = vpop.f32.mrb[2].mxu1 }
 0x289   :  { %v2784_v7 = vadd.f32 %v1145_v6, %v507_v53  ;;  %v2283_v34 = vpop.f32.mrb[3].mxu1 }
 0x28b   :  { %v1149_v19 = vmax.f32 %v2784_v7, 0.0 }
 0x28d   :  { %v3370_v24 = vand.u32 4294901760, %v1149_v19 }
 0x28f   :  { %v1252_v21 = vsub.f32 %v1149_v19, %v3370_v24 }
 0x291   :  { %v1253_v10 = vand.u32 4294901760, %v1252_v21 }
 0x293   :  { %v1254_v9 = vsub.f32 %v1252_v21, %v1253_v10 }
 0x295   :  { %v1255_v48 = vand.u32 4294901760, %v1254_v9 }
 0x297   :  { %2317 = vmatmul.mubr.f32.vlgmr.msra.gmra.mrb[2].mxu0 %v1255_v48 }
 0x298   :  { %2664 = vmatpush3.bf16.msra.mxu0 %v3296_v63  ;;  %2351 = vmatprep.mubr.msk.f32.mxu0 %vm2873_vm0, %v2872_v0  ;;  %v2735_v63 = vpack.c.bf16 %v1271_v37, %v1264_v51  ;;  %v2750_v51 = vpack.c.bf16 %v3528_v14, %v3527_v13  ;;  %v2753_v37 = vpack.c.bf16 %v3530_v52, %v3529_v42 }
 0x299   :  { %2665 = vmatprep.subr.bf16.mxu0 %v2874_v33 }
 0x29c   :  { %2667 = vmatpush3.bf16.msra.mxu0 %v2666_v17  ;;  %v2738_v17 = vpack.c.bf16 %v1285_v20, %v1278_v15  ;;  %v2756_v15 = vpack.c.bf16 %v3532_v60, %v3531_v59 }
 0x29d   :  { %2668 = vmatprep.subr.bf16.mxu0 %v2874_v33 }
 0x2a0   :  { %2670 = vmatpush3.bf16.msra.mxu0 %v2669_v3 }
 0x2a1   :  { %2671 = vmatprep.subr.bf16.mxu0 %v2874_v33 }
 0x2a4   :  { %2673 = vmatpush3.bf16.msra.mxu0 %v2672_v5 }
 0x2a5   :  { %2674 = vmatprep.subr.bf16.mxu0 %v2874_v33 }
 0x2a8   :  { %2676 = vmatpush3.bf16.msra.mxu0 %v2675_v43 }
 0x2a9   :  { %2677 = vmatprep.subr.bf16.mxu0 %v2874_v33 }
 0x2ac   :  { %2679 = vmatpush3.bf16.msra.mxu0 %v2678_v31 }
 0x2ad   :  { %2680 = vmatprep.subr.bf16.mxu0 %v2874_v33 }
 0x2b0   :  { %2682 = vmatpush3.bf16.msra.mxu0 %v2681_v35 }
 0x2b1   :  { %2683 = vmatprep.subr.bf16.mxu0 %v2874_v33 }
 0x2b4   :  { %2685 = vmatpush3.bf16.msra.mxu0 %v2684_v8 }
 0x2b5   :  { %2686 = vmatprep.subr.bf16.mxu0 %v2874_v33 }
 0x2b7   :  { %2352 = vmatmul.mubr.f32.vlgmr.msra.gmra.mrb[2].mxu0 %v3370_v24 }
 0x2b8   :  { %2688 = vmatpush3.bf16.msra.mxu0 %v2687_v54  ;;  %2386 = vmatprep.mubr.msk.f32.mxu0 %vm2873_vm0, %v2872_v0 }
 0x2b9   :  { %2689 = vmatprep.subr.bf16.mxu0 %v2874_v33 }
 0x2bc   :  { %2691 = vmatpush3.bf16.msra.mxu0 %v2690_v16 }
 0x2bd   :  { %2692 = vmatprep.subr.bf16.mxu0 %v2874_v33 }
 0x2c0   :  { %2694 = vmatpush3.bf16.msra.mxu0 %v2693_v23 }
 0x2c1   :  { %2695 = vmatprep.subr.bf16.mxu0 %v2874_v33 }
 0x2c4   :  { %2697 = vmatpush3.bf16.msra.mxu0 %v2696_v1 }
 0x2c5   :  { %2698 = vmatprep.subr.bf16.mxu0 %v2874_v33 }
 0x2c8   :  { %2700 = vmatpush3.bf16.msra.mxu0 %v2699_v27 }
 0x2c9   :  { %2701 = vmatprep.subr.bf16.mxu0 %v2874_v33 }
 0x2cc   :  { %2703 = vmatpush3.bf16.msra.mxu0 %v2702_v28 }
 0x2cd   :  { %2704 = vmatprep.subr.bf16.mxu0 %v2874_v33 }
 0x2d0   :  { %2706 = vmatpush3.bf16.msra.mxu0 %v2705_v44 }
 0x2d1   :  { %2707 = vmatprep.subr.bf16.mxu0 %v2874_v33 }
 0x2d4   :  { %2709 = vmatpush3.bf16.msra.mxu0 %v2708_v45 }
 0x2d5   :  { %2710 = vmatprep.subr.bf16.mxu0 %v2874_v33 }
 0x2d7   :  { %2387 = vmatmul.mubr.f32.vlgmr.msra.gmra.mrb[2].mxu0 %v1252_v21 }
 0x2d8   :  { %2712 = vmatpush3.bf16.msra.mxu0 %v3112_v55  ;;  %2421 = vmatprep.mubr.msk.f32.mxu0 %vm2873_vm0, %v2872_v0 }
 0x2d9   :  { %2713 = vmatprep.subr.bf16.mxu0 %v2874_v33 }
 0x2dc   :  { %2715 = vmatpush3.bf16.msra.mxu0 %v3120_v29 }
 0x2dd   :  { %2716 = vmatprep.subr.bf16.mxu0 %v2874_v33 }
 0x2e0   :  { %2718 = vmatpush3.bf16.msra.mxu0 %v3146_v57 }
 0x2e1   :  { %2719 = vmatprep.subr.bf16.mxu0 %v2874_v33 }
 0x2e4   :  { %2721 = vmatpush3.bf16.msra.mxu0 %v3154_v61 }
 0x2e5   :  { %2722 = vmatprep.subr.bf16.mxu0 %v2874_v33 }
 0x2e8   :  { %2724 = vmatpush3.bf16.msra.mxu0 %v3162_v62 }
 0x2e9   :  { %2725 = vmatprep.subr.bf16.mxu0 %v2874_v33 }
 0x2ec   :  { %2727 = vmatpush3.bf16.msra.mxu0 %v3262_v4 }
 0x2ed   :  { %2728 = vmatprep.subr.bf16.mxu0 %v2874_v33 }
 0x2f0   :  { %2730 = vmatpush3.bf16.msra.mxu0 %v3266_v58 }
 0x2f1   :  { %2731 = vmatprep.subr.bf16.mxu0 %v2874_v33 }
 0x2f4   :  { %2733 = vmatpush3.bf16.msra.mxu0 %v3272_v38 }
 0x2f5   :  { %2734 = vmatprep.subr.bf16.mxu0 %v2874_v33 }
 0x2f7   :  { %2422 = vmatmul.mubr.f32.vlgmr.msra.gmra.mrb[2].mxu0 %v1253_v10 }
 0x2f8   :  { %2736 = vmatpush3.bf16.msra.mxu0 %v2735_v63  ;;  %2456 = vmatprep.mubr.msk.f32.mxu0 %vm2873_vm0, %v2872_v0 }
 0x2f9   :  { %2737 = vmatprep.subr.bf16.mxu0 %v2874_v33 }
 0x2fc   :  { %2739 = vmatpush3.bf16.msra.mxu0 %v2738_v17 }
 0x2fd   :  { %2740 = vmatprep.subr.bf16.mxu0 %v2874_v33 }
 0x300   :  { %2742 = vmatpush3.bf16.msra.mxu0 %v2741_v56 }
 0x301   :  { %2743 = vmatprep.subr.bf16.mxu0 %v2874_v33 }
 0x304   :  { %2745 = vmatpush3.bf16.msra.mxu0 %v2744_v25 }
 0x305   :  { %2746 = vmatprep.subr.bf16.mxu0 %v2874_v33 }
 0x308   :  { %2748 = vmatpush3.bf16.msra.mxu0 %v2747_v49 }
 0x309   :  { %2749 = vmatprep.subr.bf16.mxu0 %v2874_v33 }
 0x30c   :  { %2751 = vmatpush3.bf16.msra.mxu0 %v2750_v51 }
 0x30d   :  { %2752 = vmatprep.subr.bf16.mxu0 %v2874_v33 }
 0x310   :  { %2754 = vmatpush3.bf16.msra.mxu0 %v2753_v37 }
 0x311   :  { %2755 = vmatprep.subr.bf16.mxu0 %v2874_v33 }
 0x314   :  { %2757 = vmatpush3.bf16.msra.mxu0 %v2756_v15 }
 0x315   :  { %2758 = vmatprep.subr.bf16.mxu0 %v2874_v33 }
 0x317   :  { %2457 = vmatmul.mubr.f32.vlgmr.msra.gmra.mrb[2].mxu0 %v3370_v24 }
 0x318   :  { %2760 = vmatpush3.bf16.msra.mxu0 %v3112_v55  ;;  %2491 = vmatprep.mubr.msk.f32.mxu0 %vm2873_vm0, %v2872_v0  ;;  %v1168_v0 = vsub.s32 2, %v3080_v32 }
 0x319   :  { %2761 = vmatprep.subr.bf16.mxu0 %v2874_v33 }
 0x31c   :  { %2763 = vmatpush3.bf16.msra.mxu0 %v3120_v29  ;;  %v1169_v29 = vrot.slane %v3083_v47, %v1168_v0 }
 0x31d   :  { %2764 = vmatprep.subr.bf16.mxu0 %v2874_v33 }
 0x320   :  { %2766 = vmatpush3.bf16.msra.mxu0 %v3146_v57 }
 0x321   :  { %2767 = vmatprep.subr.bf16.mxu0 %v2874_v33 }
 0x324   :  { %2769 = vmatpush3.bf16.msra.mxu0 %v3154_v61 }
 0x325   :  { %2770 = vmatprep.subr.bf16.mxu0 %v2874_v33 }
 0x328   :  { %2772 = vmatpush3.bf16.msra.mxu0 %v3162_v62 }
 0x329   :  { %2773 = vmatprep.subr.bf16.mxu0 %v2874_v33 }
 0x32c   :  { %2775 = vmatpush3.bf16.msra.mxu0 %v3262_v4 }
 0x32d   :  { %2776 = vmatprep.subr.bf16.mxu0 %v2874_v33 }
 0x330   :  { %2778 = vmatpush3.bf16.msra.mxu0 %v3266_v58 }
 0x331   :  { %2779 = vmatprep.subr.bf16.mxu0 %v2874_v33 }
 0x334   :  { %2781 = vmatpush3.bf16.msra.mxu0 %v3272_v38 }
 0x337   :  { %2492 = vmatmul.mubr.f32.vlgmr.msra.gmra.mrb[2].mxu0 %v3370_v24 }
 0x40a   :  { %v1807_v55 = vpop.f32.mrb[2].mxu0 }
 0x40b   :  { %v2785_v57 = vadd.f32 %v1807_v55, %v1169_v29  ;;  %v2493_v61 = vpop.f32.mrb[3].mxu0 }
 0x40d   :  { %1812 = vst.msk [vmem:[#allocation5] sm:$0xff] %vm1811_vm3, %v2785_v57 }
 0x40e   :  { %2854 = shalt.err (!%p2851_p12)
}
 0x40f   :  { %s2855_s28 = scalar_lea.hbm %s3490_s2, 128 }
 0x410   :  { %p2856_p13 = scmp.ne.s32.totalorder %s3490_s2, %s2855_s28  ;;  %p2859_p0 = scmp.lt.u32.totalorder %s2855_s28, %s3490_s2 }
 0x412   :  { %p2861_p1 = pnand %p2859_p0, %p2856_p13 }
 0x414   :  { %2864 = shalt.err (!%p2861_p1)
}
 0x415   :  { %1822 = dma.vmem_to_hbm [thread:$0]  %s1820_s1, 128, %s3490_s2, [#allocation4]  }
 0x416   :  { %2867 = dma.done.wait [#allocation4], 128  }
 0x417   :  { %2868 = vsyncadd [#allocation4], 4294967168 }
 0x418   :  { %1826 = vsyncpa [#allocation3], 1 }
 0x419   :  { %1827 = vsyncpa [#allocation4], 1 }

</bundles_post_ra>
